<compile_context>
chip_gen: v6e
topology: v6e:2x2x1
jax: 0.10.0
libtpu: 0.0.40
codegen_flags: <defaults>
</compile_context>

<pallas_src>
import jax
import jax.numpy as jnp
from jax.experimental import pallas as pl
from jax.experimental.pallas import tpu as pltpu


def _round_up(x, m):
    return ((x + m - 1) // m) * m


def dqn_kernel(x_ref,
               w1_ref, b1_ref,
               w2_ref, b2_ref,
               w3_ref, b3_ref,
               w4_ref, b4_ref,
               o_ref):
    # x / weights are bf16; accumulate in f32, biases are f32.
    x = x_ref[...]

    h = jnp.dot(x, w1_ref[...], preferred_element_type=jnp.float32) + b1_ref[...]
    h = jnp.maximum(h, 0.0).astype(jnp.bfloat16)

    h = jnp.dot(h, w2_ref[...], preferred_element_type=jnp.float32) + b2_ref[...]
    h = jnp.maximum(h, 0.0).astype(jnp.bfloat16)

    h = jnp.dot(h, w3_ref[...], preferred_element_type=jnp.float32) + b3_ref[...]
    h = jnp.maximum(h, 0.0).astype(jnp.bfloat16)

    out = jnp.dot(h, w4_ref[...], preferred_element_type=jnp.float32) + b4_ref[...]
    o_ref[...] = out.astype(o_ref.dtype)


def recommendations_dqn_forward(x, params, *, tm=256):
    """x: (B, inputSize) f32; params: dict of w1..w4 (in, out) and b1..b4 (1, out)."""
    B, in_size = x.shape
    out_size = params["w4"].shape[1]

    # Batch tile: fill the MXU (256 rows) when the batch allows it, otherwise
    # shrink to a sublane-aligned tile so tiny batches don't blow up padding.
    TM = min(tm, _round_up(B, 8))
    B_pad = _round_up(B, TM)
    OUT_PAD = _round_up(out_size, 128)   # lane-dense output slab

    # Cast activations / weights to bf16 (f32 accumulation in the kernel),
    # zero-pad the batch and the final-layer output columns.
    x_p = jnp.zeros((B_pad, in_size), jnp.bfloat16).at[:B, :].set(
        x.astype(jnp.bfloat16))

    w1 = params["w1"].astype(jnp.bfloat16)
    w2 = params["w2"].astype(jnp.bfloat16)
    w3 = params["w3"].astype(jnp.bfloat16)
    w4 = jnp.zeros((params["w4"].shape[0], OUT_PAD), jnp.bfloat16).at[
        :, :out_size].set(params["w4"].astype(jnp.bfloat16))

    b1 = params["b1"]
    b2 = params["b2"]
    b3 = params["b3"]
    b4 = jnp.zeros((1, OUT_PAD), jnp.float32).at[:, :out_size].set(params["b4"])

    def row_spec(feat):
        # batch-tiled array: block index advances with the grid
        return pl.BlockSpec((TM, feat), lambda i: (i, 0))

    def resident_spec(shape):
        # weights/biases: pinned to block (0, 0) -> DMA'd once, stay in VMEM
        return pl.BlockSpec(shape, lambda i: (0, 0))

    grid = (pl.cdiv(B_pad, TM),)

    out_padded = pl.pallas_call(
        dqn_kernel,
        out_shape=jax.ShapeDtypeStruct((B_pad, OUT_PAD), jnp.float32),
        grid=grid,
        in_specs=[
            row_spec(in_size),
            resident_spec(w1.shape), resident_spec(b1.shape),
            resident_spec(w2.shape), resident_spec(b2.shape),
            resident_spec(w3.shape), resident_spec(b3.shape),
            resident_spec(w4.shape), resident_spec(b4.shape),
        ],
        out_specs=row_spec(OUT_PAD),
        compiler_params=pltpu.CompilerParams(
            dimension_semantics=("parallel",)),
    )(x_p, w1, b1, w2, b2, w3, b3, w4, b4)

    return out_padded[:B, :out_size]


def init_params(key, input_size, output_size):
    """Deterministic init mirroring nn.Linear's U(-1/sqrt(fan_in), 1/sqrt(fan_in))."""
    sizes = [(input_size, 256), (256, 128), (128, 64), (64, output_size)]
    params = {}
    for i, (fan_in, fan_out) in enumerate(sizes, start=1):
        key, kw, kb = jax.random.split(key, 3)
        bound = 1.0 / jnp.sqrt(jnp.float32(fan_in))
        # stored as (in, out): transpose of PyTorch's (out, in) weight
        params[f"w{i}"] = jax.random.uniform(
            kw, (fan_in, fan_out), jnp.float32, -bound, bound)
        params[f"b{i}"] = jax.random.uniform(
            kb, (1, fan_out), jnp.float32, -bound, bound)
    return params


def reference_forward(x, params):
    h = x
    for i in range(1, 4):
        h = jnp.maximum(h @ params[f"w{i}"] + params[f"b{i}"], 0.0)
    return h @ params["w4"] + params["b4"]


if __name__ == "__main__":
    input_size = 32   # "inputSize"
    output_size = 8   # "outputSize"
    batch = 2

    key = jax.random.PRNGKey(0)
    key, kx = jax.random.split(key)
    x = jax.random.normal(kx, (batch, input_size), jnp.float32)
    params = init_params(key, input_size, output_size)

    out = recommendations_dqn_forward(x, params)
    out = jax.block_until_ready(out)

    ref = reference_forward(x, params)
    assert out.shape == (batch, output_size)
    # bf16 weights/activations with f32 accumulation -> loosened tolerance.
    assert jnp.allclose(out, ref, atol=3e-2, rtol=3e-2)

    print("KERNEL_OK")
</pallas_src>

<mosaic_0001>
module attributes {stable_mosaic.version = 11 : i64} {
  func.func @dqn_kernel(%arg0: i32, %arg1: memref<8x32xbf16, #tpu.memory_space<vmem>>, %arg2: memref<32x256xbf16, #tpu.memory_space<vmem>>, %arg3: memref<1x256xf32, #tpu.memory_space<vmem>>, %arg4: memref<256x128xbf16, #tpu.memory_space<vmem>>, %arg5: memref<1x128xf32, #tpu.memory_space<vmem>>, %arg6: memref<128x64xbf16, #tpu.memory_space<vmem>>, %arg7: memref<1x64xf32, #tpu.memory_space<vmem>>, %arg8: memref<64x128xbf16, #tpu.memory_space<vmem>>, %arg9: memref<1x128xf32, #tpu.memory_space<vmem>>, %arg10: memref<8x128xf32, #tpu.memory_space<vmem>>) attributes {dimension_semantics = [#tpu.dimension_semantics<parallel>], iteration_bounds = array<i64: 1>, scalar_prefetch = 0 : i64, scratch_operands = 0 : i64, tpu.core_type = #tpu.core_type<tc>, window_params = [{transform_indices = @transform_0, window_bounds = array<i64: 8, 32>}, {pipeline_mode = #tpu.pipeline_mode<synchronous>, transform_indices = @transform_1, window_bounds = array<i64: 32, 256>}, {pipeline_mode = #tpu.pipeline_mode<synchronous>, transform_indices = @transform_2, window_bounds = array<i64: 1, 256>}, {pipeline_mode = #tpu.pipeline_mode<synchronous>, transform_indices = @transform_3, window_bounds = array<i64: 256, 128>}, {pipeline_mode = #tpu.pipeline_mode<synchronous>, transform_indices = @transform_4, window_bounds = array<i64: 1, 128>}, {pipeline_mode = #tpu.pipeline_mode<synchronous>, transform_indices = @transform_5, window_bounds = array<i64: 128, 64>}, {pipeline_mode = #tpu.pipeline_mode<synchronous>, transform_indices = @transform_6, window_bounds = array<i64: 1, 64>}, {pipeline_mode = #tpu.pipeline_mode<synchronous>, transform_indices = @transform_7, window_bounds = array<i64: 64, 128>}, {pipeline_mode = #tpu.pipeline_mode<synchronous>, transform_indices = @transform_8, window_bounds = array<i64: 1, 128>}, {transform_indices = @transform_9, window_bounds = array<i64: 8, 128>}]} {
    %c0 = arith.constant 0 : index
    %c0_0 = arith.constant 0 : index
    %0 = vector.load %arg1[%c0, %c0_0] : memref<8x32xbf16, #tpu.memory_space<vmem>>, vector<8x32xbf16>
    %c0_1 = arith.constant 0 : index
    %c0_2 = arith.constant 0 : index
    %1 = vector.load %arg2[%c0_1, %c0_2] : memref<32x256xbf16, #tpu.memory_space<vmem>>, vector<32x256xbf16>
    %cst = arith.constant dense<0.000000e+00> : vector<8x256xf32>
    %2 = tpu.matmul %0, %1, %cst {dimension_numbers = #tpu.dot_dimension_numbers<[1], [0], [0], [1], [0, 0, 1, 1], [], []>} : vector<8x32xbf16>, vector<32x256xbf16>, vector<8x256xf32> -> vector<8x256xf32>
    %c0_3 = arith.constant 0 : index
    %c0_4 = arith.constant 0 : index
    %3 = vector.load %arg3[%c0_3, %c0_4] : memref<1x256xf32, #tpu.memory_space<vmem>>, vector<1x256xf32>
    %4 = vector.broadcast %3 : vector<1x256xf32> to vector<8x256xf32>
    %5 = arith.addf %2, %4 : vector<8x256xf32>
    %cst_5 = arith.constant 0.000000e+00 : f32
    %6 = vector.broadcast %cst_5 : f32 to vector<8x256xf32>
    %7 = arith.maximumf %5, %6 : vector<8x256xf32>
    %8 = arith.truncf %7 : vector<8x256xf32> to vector<8x256xbf16>
    %c0_6 = arith.constant 0 : index
    %c0_7 = arith.constant 0 : index
    %9 = vector.load %arg4[%c0_6, %c0_7] : memref<256x128xbf16, #tpu.memory_space<vmem>>, vector<256x128xbf16>
    %cst_8 = arith.constant dense<0.000000e+00> : vector<8x128xf32>
    %10 = tpu.matmul %8, %9, %cst_8 {dimension_numbers = #tpu.dot_dimension_numbers<[1], [0], [0], [1], [0, 0, 1, 1], [], []>} : vector<8x256xbf16>, vector<256x128xbf16>, vector<8x128xf32> -> vector<8x128xf32>
    %c0_9 = arith.constant 0 : index
    %c0_10 = arith.constant 0 : index
    %11 = vector.load %arg5[%c0_9, %c0_10] : memref<1x128xf32, #tpu.memory_space<vmem>>, vector<1x128xf32>
    %12 = vector.broadcast %11 : vector<1x128xf32> to vector<8x128xf32>
    %13 = arith.addf %10, %12 : vector<8x128xf32>
    %cst_11 = arith.constant 0.000000e+00 : f32
    %14 = vector.broadcast %cst_11 : f32 to vector<8x128xf32>
    %15 = arith.maximumf %13, %14 : vector<8x128xf32>
    %16 = arith.truncf %15 : vector<8x128xf32> to vector<8x128xbf16>
    %c0_12 = arith.constant 0 : index
    %c0_13 = arith.constant 0 : index
    %17 = vector.load %arg6[%c0_12, %c0_13] : memref<128x64xbf16, #tpu.memory_space<vmem>>, vector<128x64xbf16>
    %cst_14 = arith.constant dense<0.000000e+00> : vector<8x64xf32>
    %18 = tpu.matmul %16, %17, %cst_14 {dimension_numbers = #tpu.dot_dimension_numbers<[1], [0], [0], [1], [0, 0, 1, 1], [], []>} : vector<8x128xbf16>, vector<128x64xbf16>, vector<8x64xf32> -> vector<8x64xf32>
    %c0_15 = arith.constant 0 : index
    %c0_16 = arith.constant 0 : index
    %19 = vector.load %arg7[%c0_15, %c0_16] : memref<1x64xf32, #tpu.memory_space<vmem>>, vector<1x64xf32>
    %20 = vector.broadcast %19 : vector<1x64xf32> to vector<8x64xf32>
    %21 = arith.addf %18, %20 : vector<8x64xf32>
    %cst_17 = arith.constant 0.000000e+00 : f32
    %22 = vector.broadcast %cst_17 : f32 to vector<8x64xf32>
    %23 = arith.maximumf %21, %22 : vector<8x64xf32>
    %24 = arith.truncf %23 : vector<8x64xf32> to vector<8x64xbf16>
    %c0_18 = arith.constant 0 : index
    %c0_19 = arith.constant 0 : index
    %25 = vector.load %arg8[%c0_18, %c0_19] : memref<64x128xbf16, #tpu.memory_space<vmem>>, vector<64x128xbf16>
    %cst_20 = arith.constant dense<0.000000e+00> : vector<8x128xf32>
    %26 = tpu.matmul %24, %25, %cst_20 {dimension_numbers = #tpu.dot_dimension_numbers<[1], [0], [0], [1], [0, 0, 1, 1], [], []>} : vector<8x64xbf16>, vector<64x128xbf16>, vector<8x128xf32> -> vector<8x128xf32>
    %c0_21 = arith.constant 0 : index
    %c0_22 = arith.constant 0 : index
    %27 = vector.load %arg9[%c0_21, %c0_22] : memref<1x128xf32, #tpu.memory_space<vmem>>, vector<1x128xf32>
    %28 = vector.broadcast %27 : vector<1x128xf32> to vector<8x128xf32>
    %29 = arith.addf %26, %28 : vector<8x128xf32>
    %c0_23 = arith.constant 0 : index
    %c0_24 = arith.constant 0 : index
    %30 = vector.load %arg10[%c0_23, %c0_24] : memref<8x128xf32, #tpu.memory_space<vmem>>, vector<8x128xf32>
    tpu.vector_store %arg10[%c0_23, %c0_24], %29 {strides = array<i32>} : memref<8x128xf32, #tpu.memory_space<vmem>>, vector<8x128xf32>,
    return
  }
  func.func @transform_0(%arg0: i32) -> (i32, i32) {
    %c0_i32 = arith.constant 0 : i32
    %c0_i32_0 = arith.constant 0 : i32
    return %arg0, %c0_i32 : i32, i32
  }
  func.func @transform_1(%arg0: i32) -> (i32, i32) {
    %c0_i32 = arith.constant 0 : i32
    %c0_i32_0 = arith.constant 0 : i32
    %c0_i32_1 = arith.constant 0 : i32
    return %c0_i32, %c0_i32_0 : i32, i32
  }
  func.func @transform_2(%arg0: i32) -> (i32, i32) {
    %c0_i32 = arith.constant 0 : i32
    %c0_i32_0 = arith.constant 0 : i32
    %c0_i32_1 = arith.constant 0 : i32
    return %c0_i32, %c0_i32_0 : i32, i32
  }
  func.func @transform_3(%arg0: i32) -> (i32, i32) {
    %c0_i32 = arith.constant 0 : i32
    %c0_i32_0 = arith.constant 0 : i32
    %c0_i32_1 = arith.constant 0 : i32
    return %c0_i32, %c0_i32_0 : i32, i32
  }
  func.func @transform_4(%arg0: i32) -> (i32, i32) {
    %c0_i32 = arith.constant 0 : i32
    %c0_i32_0 = arith.constant 0 : i32
    %c0_i32_1 = arith.constant 0 : i32
    return %c0_i32, %c0_i32_0 : i32, i32
  }
  func.func @transform_5(%arg0: i32) -> (i32, i32) {
    %c0_i32 = arith.constant 0 : i32
    %c0_i32_0 = arith.constant 0 : i32
    %c0_i32_1 = arith.constant 0 : i32
    return %c0_i32, %c0_i32_0 : i32, i32
  }
  func.func @transform_6(%arg0: i32) -> (i32, i32) {
    %c0_i32 = arith.constant 0 : i32
    %c0_i32_0 = arith.constant 0 : i32
    %c0_i32_1 = arith.constant 0 : i32
    return %c0_i32, %c0_i32_0 : i32, i32
  }
  func.func @transform_7(%arg0: i32) -> (i32, i32) {
    %c0_i32 = arith.constant 0 : i32
    %c0_i32_0 = arith.constant 0 : i32
    %c0_i32_1 = arith.constant 0 : i32
    return %c0_i32, %c0_i32_0 : i32, i32
  }
  func.func @transform_8(%arg0: i32) -> (i32, i32) {
    %c0_i32 = arith.constant 0 : i32
    %c0_i32_0 = arith.constant 0 : i32
    %c0_i32_1 = arith.constant 0 : i32
    return %c0_i32, %c0_i32_0 : i32, i32
  }
  func.func @transform_9(%arg0: i32) -> (i32, i32) {
    %c0_i32 = arith.constant 0 : i32
    %c0_i32_0 = arith.constant 0 : i32
    return %arg0, %c0_i32 : i32, i32
  }
}

</mosaic_0001>

<bundles_post_ra>
// kernel: tpu_custom_call.1
= control target key start
LH: loop header
LB: loop body
LE: loop exit
PB: predicated region body
PF: predicated region fallthrough
CT: control target
= control target key end

     0   :  { %14 = vsyncpa [#allocation3], 0  ;;  %s853_s0 = inlined_call_operand.vmem [shape: bf16[8,32], index: 0, kind: input, shape index: {}]   ;;  %s854_s1 = inlined_call_operand.vmem [shape: bf16[32,256], index: 1, kind: input, shape index: {}]   ;;  %s855_s2 = inlined_call_operand.vmem [shape: f32[1,256], index: 2, kind: input, shape index: {}]   ;;  %s856_s3 = inlined_call_operand.hbm [shape: bf16[256,128], index: 3, kind: input, shape index: {}]   ;;  %s857_s4 = inlined_call_operand.vmem [shape: f32[1,128], index: 4, kind: input, shape index: {}]   ;;  %s858_s5 = inlined_call_operand.vmem [shape: bf16[128,64], index: 5, kind: input, shape index: {}]   ;;  %s859_s6 = inlined_call_operand.vmem [shape: f32[1,64], index: 6, kind: input, shape index: {}]   ;;  %s860_s7 = inlined_call_operand.vmem [shape: bf16[64,128], index: 7, kind: input, shape index: {}]   ;;  %s861_s8 = inlined_call_operand.vmem [shape: f32[1,128], index: 8, kind: input, shape index: {}]   ;;  %s862_s9 = inlined_call_operand.hbm [shape: f32[8,128], index: 9, kind: output, shape index: {}]  }
   0x1   :  { %15 = vsyncpa [#allocation4], 0  ;;  %s713_s30 = smov [#allocation2]  }
   0x2   :  { %s27_s10 = sshll.u32 %s713_s30, 4  ;;  %s28_s10 = int_to_ptr.vmem [resolvable:$true] %s27_s10 }
   0x3   :  { %s677_s11 = scalar_lea.vmem %s28_s10, 2048  ;;  %p682_p1 = scmp.lt.s32.totalorder %s28_s10, %s28_s10 }
   0x4   :  { %p678_p0 = scmp.ne.s32.totalorder %s28_s10, %s677_s11  ;;  %p683_p2 = scmp.lt.s32.totalorder %s677_s11, %s677_s11 }
   0x6   :  { %p684_p3 = por %p683_p2, %p682_p1 }
   0x8   :  { %p685_p4 = pnand %p684_p3, %p678_p0 }
   0xa   :  { %688 = shalt.err (!%p685_p4)
}
   0xb   :  { %s714_s12 = smov 64   ;;  %s715_s13 = smov 4  }
   0xc   :  { %33 = dma.hbm_to_vmem [thread:$0]  %s856_s3, 2048, %s28_s10, [#allocation3], %s714_s12, %s714_s12, %s715_s13  }
   0xd   :  { %709 = dma.done.wait [#allocation3], 2048  }
   0xe   :  { %710 = vsyncadd [#allocation3], 4294965248  ;;  %v716_v0 = vmov 0   ;;  %v635_v1 = vld [vmem:[%s854_s1 + $0x14] ss:$8 sps:$4 sm:$0xff]   ;;  %vm85_vm0 = vcmask 261120   ;;  %v55_v28 = vlaneseq }
   0xf   :  { %121 = vmatprep.mubr.bf16.mxu0 %v716_v0  ;;  %v637_v2 = vld [vmem:[%s854_s1 + $0x10] ss:$8 sps:$4 sm:$0xff]   ;;  %101 = vmatprep.subr.bf16.mxu0 %v635_v1  ;;  %v638_v3 = vld [vmem:[%s854_s1 + $0x4] ss:$8 sps:$4 sm:$0xff]   ;;  %v640_v4 = vld [vmem:[%s854_s1] ss:$8 sps:$4 sm:$0xff]  }
  0x10   :  { %102 = vmatpush1.bf16.msra.mxu0 %v637_v2  ;;  %v641_v5 = vld [vmem:[#allocation2 + $0x78] sm:$0xff]   ;;  %v48_v7 = vld [vmem:[%s853_s0] sm:$0xf]  ;;  %v643_v8 = vld [vmem:[#allocation2 + $0x70] sm:$0xff]   ;;  %v717_v23 = vmov 0.0   ;;  %v56_v29 = vshrl.u32 %v55_v28, 7 }
  0x11   :  { %103 = vmatprep.subr.bf16.mxu0 %v638_v3  ;;  %v642_v6 = vld [vmem:[#allocation2 + $0x38] sm:$0xff]   ;;  %560 = vmatprep.subr.bf16.mxu1 %v641_v5  ;;  %v644_v9 = vld [vmem:[#allocation2 + $0x30] sm:$0xff]   ;;  %v645_v10 = vld [vmem:[#allocation2 + $0x68] sm:$0xff]   ;;  %vm718_vm1 = vmmov 0   ;;  %vm463_vm2 = vcmask 523264   ;;  %s719_s28 = smov [#allocation5]  }
  0x12   :  { %561 = vmatpush3.bf16.msra.mxu1 %v642_v6  ;;  %v646_v11 = vld [vmem:[#allocation2 + $0x28] sm:$0xff]   ;;  %v647_v12 = vld [vmem:[#allocation2 + $0x60] sm:$0xff]   ;;  %v649_v14 = vld [vmem:[#allocation2 + $0x58] sm:$0xff]   ;;  %v57_v30 = vsub.s32 0, %v56_v29  ;;  %v61_v32 = vsub.s32 1, %v56_v29 }
  0x13   :  { %562 = vmatprep.subr.bf16.mxu1 %v643_v8  ;;  %v648_v13 = vld [vmem:[#allocation2 + $0x20] sm:$0xff]   ;;  %v650_v15 = vld [vmem:[#allocation2 + $0x18] sm:$0xff]   ;;  %v651_v16 = vld [vmem:[#allocation2 + $0x50] sm:$0xff]  }
  0x14   :  { %104 = vmatpush1.bf16.msra.mxu0 %v640_v4  ;;  %v652_v17 = vld [vmem:[#allocation2 + $0x10] sm:$0xff]   ;;  %v653_v18 = vld [vmem:[#allocation2 + $0x48] sm:$0xff]   ;;  %v655_v20 = vld [vmem:[#allocation2 + $0x40] sm:$0xff]  }
  0x15   :  { %v654_v19 = vld [vmem:[#allocation2 + $0x8] sm:$0xff]   ;;  %v656_v21 = vld [vmem:[#allocation2] sm:$0xff]   ;;  %v657_v22 = vld [vmem:[%s858_s5 + $0x38] sm:$0xff]   ;;  %596 = vmatprep.subr.bf16.mxu0 %v717_v23 }
  0x16   :  { %563 = vmatpush3.bf16.msra.mxu1 %v644_v9  ;;  %v658_v24 = vld [vmem:[%s858_s5 + $0x30] sm:$0xff]   ;;  %v659_v25 = vld [vmem:[%s858_s5 + $0x28] sm:$0xff]   ;;  %v660_v26 = vld [vmem:[%s858_s5 + $0x20] sm:$0xff]  }
  0x17   :  { %527 = vmatmul.mubr.msk.bf16.vlgmr.msra.gmra.mxu0 %vm85_vm0, %v48_v7  ;;  %564 = vmatprep.subr.bf16.mxu1 %v645_v10  ;;  %v661_v27 = vld [vmem:[%s858_s5 + $0x18] sm:$0xff]   ;;  %v53_v31 = vld [vmem:[%s855_s2] sm:$0x3]  ;;  %v662_v45 = vld [vmem:[%s858_s5 + $0x10] sm:$0xff]  }
  0x18   :  { %597 = vmatpush3.bf16.msra.mxu0 %v657_v22  ;;  %v58_v33 = vrot.slane %v53_v31, %v57_v30  ;;  %v62_v34 = vrot.slane %v53_v31, %v61_v32  ;;  %v663_v46 = vld [vmem:[%s858_s5 + $0x8] sm:$0xff]   ;;  %v664_v47 = vld [vmem:[%s858_s5] sm:$0xff]   ;;  %612 = vmatprep.mubr.msk.bf16.mxu0 %vm718_vm1, %v717_v23  ;;  %v665_v48 = vld [vmem:[%s860_s7 + $0x18] sm:$0xff]  }
  0x19   :  { %598 = vmatprep.subr.bf16.mxu0 %v717_v23  ;;  %v666_v49 = vld [vmem:[%s860_s7 + $0x10] sm:$0xff]   ;;  %v528_v51 = vld [vmem:[%s857_s4] ss:$0 sm:$0xff]  ;;  %v667_v59 = vld [vmem:[%s860_s7 + $0x8] sm:$0xff]  }
  0x1a   :  { %565 = vmatpush3.bf16.msra.mxu1 %v646_v11  ;;  %v668_v60 = vld [vmem:[%s860_s7] sm:$0xff]   ;;  %s514_s7 = sshll.u32 %s719_s28, 4  ;;  %s515_s7 = int_to_ptr.vmem [resolvable:$true] %s514_s7 }
  0x1b   :  { %566 = vmatprep.subr.bf16.mxu1 %v647_v12  ;;  %v545_v61 = vld [vmem:[%s859_s6] ss:$0 sm:$0xff]  ;;  %s689_s6 = scalar_lea.vmem %s515_s7, 128  ;;  %p694_p6 = scmp.lt.s32.totalorder %s515_s7, %s515_s7 }
  0x1c   :  { %599 = vmatpush3.bf16.msra.mxu0 %v658_v24  ;;  %v554_v5 = vld [vmem:[%s861_s8] ss:$0 sm:$0xff]  ;;  %p690_p5 = scmp.ne.s32.totalorder %s515_s7, %s689_s6  ;;  %p695_p7 = scmp.lt.s32.totalorder %s689_s6, %s689_s6 }
  0x1d   :  { %600 = vmatprep.subr.bf16.mxu0 %v717_v23 }
  0x1e   :  { %567 = vmatpush3.bf16.msra.mxu1 %v648_v13  ;;  %p696_p8 = por %p695_p7, %p694_p6 }
  0x1f   :  { %568 = vmatprep.subr.bf16.mxu1 %v649_v14 }
  0x20   :  { %601 = vmatpush3.bf16.msra.mxu0 %v659_v25  ;;  %p697_p9 = pnand %p696_p8, %p690_p5 }
  0x21   :  { %602 = vmatprep.subr.bf16.mxu0 %v717_v23 }
  0x22   :  { %569 = vmatpush3.bf16.msra.mxu1 %v650_v15 }
  0x23   :  { %570 = vmatprep.subr.bf16.mxu1 %v651_v16 }
  0x24   :  { %603 = vmatpush3.bf16.msra.mxu0 %v660_v26 }
  0x25   :  { %604 = vmatprep.subr.bf16.mxu0 %v717_v23 }
  0x26   :  { %571 = vmatpush3.bf16.msra.mxu1 %v652_v17 }
  0x27   :  { %572 = vmatprep.subr.bf16.mxu1 %v653_v18 }
  0x28   :  { %605 = vmatpush3.bf16.msra.mxu0 %v661_v27 }
  0x29   :  { %606 = vmatprep.subr.bf16.mxu0 %v717_v23 }
  0x2a   :  { %573 = vmatpush3.bf16.msra.mxu1 %v654_v19 }
  0x2b   :  { %574 = vmatprep.subr.bf16.mxu1 %v655_v20 }
  0x2c   :  { %607 = vmatpush3.bf16.msra.mxu0 %v662_v45 }
  0x2d   :  { %608 = vmatprep.subr.bf16.mxu0 %v717_v23 }
  0x2e   :  { %575 = vmatpush3.bf16.msra.mxu1 %v656_v21 }
  0x2f   :  { %616 = vmatprep.subr.bf16.mxu1 %v717_v23 }
  0x30   :  { %609 = vmatpush3.bf16.msra.mxu0 %v663_v46 }
  0x31   :  { %610 = vmatprep.subr.bf16.mxu0 %v717_v23 }
  0x34   :  { %611 = vmatpush3.bf16.msra.mxu0 %v664_v47 }
  0xd7   :  { %v123_v35 = vpop.f32.mrf.mxu0 }
  0xd8   :  { %v124_v36 = vadd.f32 %v123_v35, %v58_v33 }
  0xd9   :  { %v125_v37 = vpop.f32.mrf.mxu0 }
  0xda   :  { %v126_v38 = vadd.f32 %v125_v37, %v62_v34  ;;  %v130_v39 = vmax.f32 %v124_v36, 0.0 }
  0xdb   :  { %v127_v40 = vpop.f32.mrf.mxu0 }
  0xdc   :  { %v131_v41 = vmax.f32 %v126_v38, 0.0  ;;  %v132_v44 = vpack.c.bf16 %v130_v39, %v130_v39 }
  0xdd   :  { %v128_v42 = vpop.f32.mrf.mxu0 }
  0xde   :  { %v133_v43 = vpack.c.bf16 %v131_v41, %v131_v41 }
  0xe0   :  { %301 = vmatprep.mubr.bf16.mxu1 %v133_v43 }
  0xe1   :  { %302 = vmatmul.mubr.bf16.vlgmr.msra.gmra.mxu1 %v132_v44 }
  0xe2   :  { %624 = vmatprep.mubr.msk.bf16.mxu1 %vm718_vm1, %v717_v23  ;;  %617 = vmatpush3.bf16.msra.mxu1 %v665_v48 }
  0xe3   :  { %618 = vmatprep.subr.bf16.mxu1 %v717_v23 }
  0xe6   :  { %619 = vmatpush3.bf16.msra.mxu1 %v666_v49 }
  0xe7   :  { %620 = vmatprep.subr.bf16.mxu1 %v717_v23 }
  0xea   :  { %621 = vmatpush3.bf16.msra.mxu1 %v667_v59 }
  0xeb   :  { %622 = vmatprep.subr.bf16.mxu1 %v717_v23 }
  0xee   :  { %623 = vmatpush3.bf16.msra.mxu1 %v668_v60 }
 0x1a1   :  { %v576_v50 = vpop.f32.mrf.mxu1 }
 0x1a3   :  { %v577_v52 = vpop.f32.mrf.mxu1 }
 0x1a4   :  { %v578_v53 = vadd.f32 %v577_v52, %v576_v50 }
 0x1a5   :  { %v579_v54 = vpop.f32.mrf.mxu1 }
 0x1a6   :  { %v304_v55 = vadd.f32 %v578_v53, %v528_v51 }
 0x1a7   :  { %v580_v56 = vpop.f32.mrf.mxu1 }
 0x1a8   :  { %v309_v57 = vmax.f32 %v304_v55, 0.0 }
 0x1aa   :  { %v310_v58 = vpack.c.bf16 %v309_v57, %v309_v57 }
 0x1ac   :  { %613 = vmatmul.mubr.bf16.vlgmr.msra.gmra.mxu0 %v310_v58 }
 0x26c   :  { %v416_v62 = vpop.f32.mrf.mxu0 }
 0x26d   :  { %v417_v63 = vadd.f32 %v545_v61, %v416_v62 }
 0x26e   :  { %v614_v0 = vpop.f32.mrf.mxu0 }
 0x26f   :  { %v422_v1 = vmax.f32 %v417_v63, 0.0 }
 0x270   :  { %v419_v2 = vpop.f32.mrf.mxu0 }
 0x271   :  { %v423_v3 = vpack.c.bf16 %v422_v1, %v422_v1 }
 0x272   :  { %v615_v4 = vpop.f32.mrf.mxu0 }
 0x273   :  { %625 = vmatmul.mubr.msk.bf16.vlgmr.msra.gmra.mxu1 %vm463_vm2, %v423_v3 }
 0x333   :  { %v501_v6 = vpop.f32.mrf.mxu1 }
 0x334   :  { %v502_v7 = vadd.f32 %v554_v5, %v501_v6 }
 0x335   :  { %v626_v8 = vpop.f32.mrf.mxu1 }
 0x336   :  { %507 = vst [vmem:[#allocation5] sm:$0xff] %v502_v7 }
 0x337   :  { %v504_v9 = vpop.f32.mrf.mxu1 }
 0x338   :  { %700 = shalt.err (!%p697_p9)
}
 0x339   :  { %517 = dma.vmem_to_hbm [thread:$0]  %s515_s7, 128, %s862_s9, [#allocation4]   ;;  %v627_v10 = vpop.f32.mrf.mxu1 }
 0x33a   :  { %711 = dma.done.wait [#allocation4], 128  }
 0x33b   :  { %712 = vsyncadd [#allocation4], 4294967168 }
 0x33c   :  { %521 = vsyncpa [#allocation3], 1 }
 0x33d   :  { %522 = vsyncpa [#allocation4], 1 }

</bundles_post_ra>
